<compile_context>
chip_gen: v7x
topology: tpu7x:2x2x1
jax: 0.10.0
libtpu: 0.0.40
codegen_flags: <defaults>
</compile_context>

<pallas_src>
import functools

import jax
import jax.numpy as jnp
from jax import lax
from jax.experimental import pallas as pl
from jax.experimental.pallas import tpu as pltpu


def _concat_kernel(x_ref, w_ref, b_ref, out_ref, *, kh, kw, w_img, n_pos):
    # x_ref:  [Cin_p, L_pad]   channels-first, flattened N*H*W positions (+ zero pad)
    # w_ref:  [Ctot, kh*kw*Cin_p]  fused (branch A + branch B center-tap) weights
    # b_ref:  [Ctot, 1]
    # out_ref:[Ctot, n_pos]    lane-dense output slab (n_pos = N*H*W)
    x = x_ref[...]

    # Build the 9-tap im2col slab with static lane-shift slices of the
    # channels-first layout (each slice is a cheap lane rotation, no 2-D
    # relayout).  Tap order = (dy, dx) row-major, matching the fused weight.
    slabs = []
    for dy in range(kh):
        for dx in range(kw):
            off = dy * w_img + dx
            slabs.append(x[:, off:off + n_pos])
    xs = jnp.concatenate(slabs, axis=0)          # [kh*kw*Cin_p, n_pos]

    # Single fused matmul producing ALL output channels (both branches) at once.
    acc = jnp.dot(w_ref[...], xs, preferred_element_type=jnp.float32)
    out_ref[...] = (acc + b_ref[...]).astype(out_ref.dtype)


def concat_forward(x_nchw, wa_hwio, ba, wb_io, bb):
    """Forward of Concat(dim=1, conv3x3_valid, conv1x1). NCHW in / NCHW out."""
    N, Cin, H, W = x_nchw.shape
    KH, KW, _, CoutA = wa_hwio.shape
    CoutB = wb_io.shape[-1]
    Ho, Wo = H - (KH - 1), W - (KW - 1)
    Ctot = CoutA + CoutB

    # --- layout prep (tiny, wrapper-side plumbing) ---
    Cin_p = ((Cin + 7) // 8) * 8                 # pad channels to sublane tile
    L = N * H * W                                # flattened position count
    max_off = (KH - 1) * W + (KW - 1)
    L_pad = ((L + max_off + 127) // 128) * 128   # keep shifted slices in-bounds

    x_cf = jnp.transpose(x_nchw, (1, 0, 2, 3)).reshape(Cin, L)
    x_cf = jnp.pad(x_cf, ((0, Cin_p - Cin), (0, L_pad - L)))

    # Fused weight: branch A fills all taps; branch B (1x1) only the center tap
    # (which is exactly the center-crop offset of the Concat module).
    wa_k = jnp.transpose(wa_hwio, (3, 0, 1, 2))                  # [CoutA,KH,KW,Cin]
    wa_k = jnp.pad(wa_k, ((0, 0), (0, 0), (0, 0), (0, Cin_p - Cin)))
    wa_k = wa_k.reshape(CoutA, KH * KW * Cin_p)
    wb_full = jnp.zeros((CoutB, KH, KW, Cin_p), wb_io.dtype)
    wb_full = wb_full.at[:, KH // 2, KW // 2, :Cin].set(wb_io.T)
    wb_k = wb_full.reshape(CoutB, KH * KW * Cin_p)
    w_fused = jnp.concatenate([wa_k, wb_k], axis=0)              # [Ctot, KH*KW*Cin_p]
    b_fused = jnp.concatenate([ba, bb]).reshape(Ctot, 1)

    # --- single-invocation Pallas kernel (grid collapsed, everything in VMEM) ---
    out_flat = pl.pallas_call(
        functools.partial(_concat_kernel, kh=KH, kw=KW, w_img=W, n_pos=L),
        out_shape=jax.ShapeDtypeStruct((Ctot, L), x_nchw.dtype),
        in_specs=[
            pl.BlockSpec(memory_space=pltpu.MemorySpace.VMEM),
            pl.BlockSpec(memory_space=pltpu.MemorySpace.VMEM),
            pl.BlockSpec(memory_space=pltpu.MemorySpace.VMEM),
        ],
        out_specs=pl.BlockSpec(memory_space=pltpu.MemorySpace.VMEM),
    )(x_cf, w_fused, b_fused)

    # Un-flatten, drop the invalid right/bottom border, back to NCHW.
    out = out_flat.reshape(Ctot, N, H, W)[:, :, :Ho, :Wo]
    return jnp.transpose(out, (1, 0, 2, 3))


def _reference(x_nchw, wa_hwio, ba, wb_io, bb):
    """Plain-JAX reference reproducing the PyTorch Concat semantics."""
    wa_oihw = jnp.transpose(wa_hwio, (3, 2, 0, 1))
    a = lax.conv_general_dilated(
        x_nchw, wa_oihw, window_strides=(1, 1), padding="VALID",
        dimension_numbers=("NCHW", "OIHW", "NCHW"))
    a = a + ba.reshape(1, -1, 1, 1)
    wb_oihw = jnp.transpose(wb_io.reshape(1, 1, *wb_io.shape), (3, 2, 0, 1))
    b = lax.conv_general_dilated(
        x_nchw, wb_oihw, window_strides=(1, 1), padding="VALID",
        dimension_numbers=("NCHW", "OIHW", "NCHW"))
    b = b + bb.reshape(1, -1, 1, 1)
    # center-crop all branches to the minimum spatial size, then concat dim=1
    t2, t3 = a.shape[2], a.shape[3]
    d2 = (b.shape[2] - t2) // 2
    d3 = (b.shape[3] - t3) // 2
    b = b[:, :, d2:d2 + t2, d3:d3 + t3]
    return jnp.concatenate([a, b], axis=1)


if __name__ == "__main__":
    N, Cin, H, W = 2, 4, 16, 16
    CoutA, CoutB = 8, 8

    key = jax.random.PRNGKey(0)
    kx, kwa, kba, kwb, kbb = jax.random.split(key, 5)
    x = jax.random.normal(kx, (N, Cin, H, W), jnp.float32)
    wa = jax.random.normal(kwa, (3, 3, Cin, CoutA), jnp.float32) * 0.1
    ba = jax.random.normal(kba, (CoutA,), jnp.float32) * 0.1
    wb = jax.random.normal(kwb, (Cin, CoutB), jnp.float32) * 0.1
    bb = jax.random.normal(kbb, (CoutB,), jnp.float32) * 0.1

    out = jax.block_until_ready(concat_forward(x, wa, ba, wb, bb))
    ref = jax.block_until_ready(_reference(x, wa, ba, wb, bb))

    assert out.shape == (N, CoutA + CoutB, H - 2, W - 2), out.shape
    assert jnp.allclose(out, ref, rtol=1e-5, atol=1e-5), "mismatch vs reference"
    print("KERNEL_OK")
</pallas_src>

<mosaic_0001>
module attributes {stable_mosaic.version = 11 : i64} {
  func.func @_concat_kernel(%arg0: memref<8x640xf32, #tpu.memory_space<vmem>>, %arg1: memref<16x72xf32, #tpu.memory_space<vmem>>, %arg2: memref<16x1xf32, #tpu.memory_space<vmem>>, %arg3: memref<16x512xf32, #tpu.memory_space<vmem>>) attributes {dimension_semantics = [], scalar_prefetch = 0 : i64, scratch_operands = 0 : i64, tpu.core_type = #tpu.core_type<tc>} {
    %c0 = arith.constant 0 : index
    %c0_0 = arith.constant 0 : index
    %0 = vector.load %arg0[%c0, %c0_0] : memref<8x640xf32, #tpu.memory_space<vmem>>, vector<8x640xf32>
    %1 = vector.extract_strided_slice %0 {offsets = [0, 0], sizes = [8, 512], strides = [1, 1]} : vector<8x640xf32> to vector<8x512xf32>
    %2 = vector.extract_strided_slice %0 {offsets = [0, 1], sizes = [8, 512], strides = [1, 1]} : vector<8x640xf32> to vector<8x512xf32>
    %3 = vector.extract_strided_slice %0 {offsets = [0, 2], sizes = [8, 512], strides = [1, 1]} : vector<8x640xf32> to vector<8x512xf32>
    %4 = vector.extract_strided_slice %0 {offsets = [0, 16], sizes = [8, 512], strides = [1, 1]} : vector<8x640xf32> to vector<8x512xf32>
    %5 = vector.extract_strided_slice %0 {offsets = [0, 17], sizes = [8, 512], strides = [1, 1]} : vector<8x640xf32> to vector<8x512xf32>
    %6 = vector.extract_strided_slice %0 {offsets = [0, 18], sizes = [8, 512], strides = [1, 1]} : vector<8x640xf32> to vector<8x512xf32>
    %7 = vector.extract_strided_slice %0 {offsets = [0, 32], sizes = [8, 512], strides = [1, 1]} : vector<8x640xf32> to vector<8x512xf32>
    %8 = vector.extract_strided_slice %0 {offsets = [0, 33], sizes = [8, 512], strides = [1, 1]} : vector<8x640xf32> to vector<8x512xf32>
    %9 = vector.extract_strided_slice %0 {offsets = [0, 34], sizes = [8, 512], strides = [1, 1]} : vector<8x640xf32> to vector<8x512xf32>
    %10 = tpu.concatenate %1, %2, %3, %4, %5, %6, %7, %8, %9 in 0 : vector<8x512xf32>, vector<8x512xf32>, vector<8x512xf32>, vector<8x512xf32>, vector<8x512xf32>, vector<8x512xf32>, vector<8x512xf32>, vector<8x512xf32>, vector<8x512xf32> -> vector<72x512xf32>
    %c0_1 = arith.constant 0 : index
    %c0_2 = arith.constant 0 : index
    %11 = vector.load %arg1[%c0_1, %c0_2] : memref<16x72xf32, #tpu.memory_space<vmem>>, vector<16x72xf32>
    %cst = arith.constant dense<0.000000e+00> : vector<16x512xf32>
    %12 = tpu.matmul %11, %10, %cst {dimension_numbers = #tpu.dot_dimension_numbers<[1], [0], [0], [1], [0, 0, 1, 1], [], []>} : vector<16x72xf32>, vector<72x512xf32>, vector<16x512xf32> -> vector<16x512xf32>
    %c0_3 = arith.constant 0 : index
    %c0_4 = arith.constant 0 : index
    %13 = vector.load %arg2[%c0_3, %c0_4] : memref<16x1xf32, #tpu.memory_space<vmem>>, vector<16x1xf32>
    %14 = vector.broadcast %13 : vector<16x1xf32> to vector<16x512xf32>
    %15 = arith.addf %12, %14 : vector<16x512xf32>
    %c0_5 = arith.constant 0 : index
    %c0_6 = arith.constant 0 : index
    %16 = vector.load %arg3[%c0_5, %c0_6] : memref<16x512xf32, #tpu.memory_space<vmem>>, vector<16x512xf32>
    tpu.vector_store %arg3[%c0_5, %c0_6], %15 {strides = array<i32>} : memref<16x512xf32, #tpu.memory_space<vmem>>, vector<16x512xf32>,
    return
  }
}

</mosaic_0001>

<bundles_post_ra>
// kernel: tpu_custom_call.1
= control target key start
LH: loop header
LB: loop body
LE: loop exit
PB: predicated region body
PF: predicated region fallthrough
CT: control target
= control target key end

     0   :  { %8 = vsyncpa [#allocation3], 0  ;;  %s687_s0 = inlined_call_operand.hbm [shape: f32[8,640], index: 0, kind: input, shape index: {}]   ;;  %s688_s1 = inlined_call_operand.vmem [shape: f32[16,72], index: 1, kind: input, shape index: {}]   ;;  %s689_s2 = inlined_call_operand.vmem [shape: f32[16,1], index: 2, kind: input, shape index: {}]   ;;  %s690_s3 = inlined_call_operand.hbm [shape: f32[16,512], index: 3, kind: output, shape index: {}]  }
   0x1   :  { %9 = vsyncpa [#allocation4], 0  ;;  %s559_s12 = smov [#allocation2]   ;;  %s511_s16 = scalar_lea.hbm %s687_s0, 640 }
   0x2   :  { %s16_s13 = sshll.u32 %s559_s12, 4  ;;  %p512_p0 = scmp.ne.s32.totalorder %s687_s0, %s511_s16  ;;  %s17_s13 = int_to_ptr.vmem [resolvable:$true] %s16_s13 }
   0x3   :  { %p515_p1 = scmp.lt.u32.totalorder %s511_s16, %s687_s0 }
   0x5   :  { %p517_p2 = pnand %p515_p1, %p512_p0 }
   0x7   :  { %520 = shalt.err (!%p517_p2)
}
   0x8   :  { %s521_s21 = scalar_lea.vmem %s17_s13, 640  ;;  %p526_p4 = scmp.lt.s32.totalorder %s17_s13, %s17_s13 }
   0x9   :  { %p522_p3 = scmp.ne.s32.totalorder %s17_s13, %s521_s21  ;;  %p527_p5 = scmp.lt.s32.totalorder %s521_s21, %s521_s21 }
   0xb   :  { %p528_p6 = por %p527_p5, %p526_p4 }
   0xd   :  { %p529_p7 = pnand %p528_p6, %p522_p3 }
   0xf   :  { %532 = shalt.err (!%p529_p7)
}
  0x10   :  { %19 = dma.hbm_to_vmem [thread:$0]  %s687_s0, 640, %s17_s13, [#allocation3]  }
  0x11   :  { %555 = dma.done.wait [#allocation3], 640  }
  0x12   :  { %556 = vsyncadd [#allocation3], 4294966656  ;;  %v605_v0 = vld [vmem:[#allocation2] sm:$0xff]  ;;  %v607_v1 = vld [vmem:[#allocation2 + $0x8] sm:$0xff]  ;;  %s560_s24 = smov 127   ;;  %s561_s0 = smov 126  }
  0x13   :  { %v609_v2 = vld [vmem:[#allocation2 + $0x10] sm:$0xff]  ;;  %37 = vrot.lane.b32.xlu1 %v605_v0, %s560_s24  ;;  %v614_v4 = vld [vmem:[#allocation2 + $0x18] sm:$0xff]  ;;  %v31_v5 = vld [vmem:[#allocation2 + $0x20] sm:$0xff]  ;;  %s562_s25 = smov 112   ;;  %s563_s26 = smov 111   ;;  %v567_v7 = vmov 0.0  }
  0x14   :  { %v439_v3 = vpack.i.bf16 %v609_v2, %v607_v1  ;;  %v444_v6 = vpack.i.bf16 %v31_v5, %v614_v4  ;;  %s564_s27 = smov 110   ;;  %s565_s28 = smov 96   ;;  %274 = vmatprep.mubr.f32.mxu0 %v567_v7  ;;  %351 = vmatprep.mubr.f32.mxu1 %v567_v7  ;;  %v569_v8 = vmov 0   ;;  %v192_v9 = vld [vmem:[%s689_s2 + $0x8] sm:$0xff]  ;;  %v191_v10 = vld [vmem:[%s689_s2] sm:$0xff]  ;;  %vm47_vm0 = vcmask 1039360  }
  0x15   :  { %s566_s29 = smov 95   ;;  %s568_s30 = smov 94   ;;  %509 = vset.pattern.permute.xlu0 %v569_v8  ;;  %510 = vset.pattern.permute.xlu1 %v569_v8  ;;  %vm66_vm1 = vcmask 1031168   ;;  %vm85_vm2 = vcmask 916480   ;;  %vm104_vm3 = vcmask 908288   ;;  %vm123_vm4 = vcmask 900096  }
  0x16   :  { %440 = vrot.lane.b32.xlu0 %v439_v3, %s560_s24  ;;  %vm142_vm5 = vcmask 785408   ;;  %vm161_vm6 = vcmask 777216   ;;  %vm180_vm7 = vcmask 769024   ;;  %vm203_vm8 = vcmask 588800  }
  0x17   :  { %450 = vrot.lane.b32.xlu1 %v439_v3, %s561_s0 }
  0x1a   :  { %445 = vrot.lane.b32.xlu0 %v444_v6, %s560_s24 }
  0x1b   :  { %460 = vrot.lane.b32.xlu1 %v439_v3, %s562_s25 }
  0x1e   :  { %455 = vrot.lane.b32.xlu0 %v444_v6, %s561_s0 }
  0x1f   :  { %56 = vrot.lane.b32.xlu1 %v605_v0, %s561_s0 }
  0x22   :  { %465 = vrot.lane.b32.xlu0 %v444_v6, %s562_s25 }
  0x23   :  { %470 = vrot.lane.b32.xlu1 %v439_v3, %s563_s26 }
  0x26   :  { %75 = vrot.lane.b32.xlu0 %v605_v0, %s562_s25 }
  0x27   :  { %480 = vrot.lane.b32.xlu1 %v439_v3, %s564_s27 }
  0x2a   :  { %475 = vrot.lane.b32.xlu0 %v444_v6, %s563_s26 }
  0x2b   :  { %94 = vrot.lane.b32.xlu1 %v605_v0, %s563_s26 }
  0x2e   :  { %485 = vrot.lane.b32.xlu0 %v444_v6, %s564_s27 }
  0x2f   :  { %490 = vrot.lane.b32.xlu1 %v439_v3, %s565_s28 }
  0x32   :  { %113 = vrot.lane.b32.xlu0 %v605_v0, %s564_s27 }
  0x33   :  { %500 = vrot.lane.b32.xlu1 %v439_v3, %s566_s29 }
  0x36   :  { %495 = vrot.lane.b32.xlu0 %v444_v6, %s565_s28 }
  0x37   :  { %132 = vrot.lane.b32.xlu1 %v605_v0, %s565_s28 }
  0x3a   :  { %505 = vrot.lane.b32.xlu0 %v444_v6, %s566_s29 }
  0x3b   :  { %172 = vrot.lane.b32.xlu1 %v607_v1, %s568_s30 }
  0x3e   :  { %151 = vrot.lane.b32.xlu0 %v605_v0, %s566_s29 }
  0x3f   :  { %176 = vrot.lane.b32.xlu1 %v614_v4, %s568_s30 }
  0x42   :  { %174 = vrot.lane.b32.xlu0 %v609_v2, %s568_s30 }
  0x43   :  { %170 = vrot.lane.b32.xlu1 %v605_v0, %s568_s30 }
  0x46   :  { %178 = vrot.lane.b32.xlu0 %v31_v5, %s568_s30 }
  0x47   :  { %200 = vperm.xlu1 %510, %v192_v9  }
  0x4a   :  { %195 = vperm.xlu0 %509, %v191_v10  }
  0x85   :  { %v38_v11 = vpop.permute.xlu1 %37 }
  0x88   :  { %v441_v12 = vpop.permute.xlu0 %440 }
  0x89   :  { %v443_v13 = vunpack.i.h.bf16 %v441_v12  ;;  %v442_v14 = vunpack.i.l.bf16 %v441_v12  ;;  %v451_v15 = vpop.permute.xlu1 %450 }
  0x8a   :  { %v453_v16 = vunpack.i.h.bf16 %v451_v15  ;;  %v452_v17 = vunpack.i.l.bf16 %v451_v15 }
  0x8b   :  { %v49_v18 = vsel %vm47_vm0, %v442_v14, %v443_v13  ;;  %v48_v19 = vsel %vm47_vm0, %v38_v11, %v442_v14 }
  0x8c   :  { %v446_v20 = vpop.permute.xlu0 %445  ;;  %v393_v21 = vpack.c.bf16 %v49_v18, %v607_v1  ;;  %v395_v22 = vpack.c.bf16 %v48_v19, %v605_v0  ;;  %v68_v26 = vsel %vm66_vm1, %v452_v17, %v453_v16 }
  0x8d   :  { %v448_v23 = vunpack.i.h.bf16 %v446_v20  ;;  %v447_v24 = vunpack.i.l.bf16 %v446_v20  ;;  %v461_v25 = vpop.permute.xlu1 %460 }
  0x8e   :  { %394 = vmatprep.subr.bf16.mxu0 %v393_v21  ;;  %v463_v27 = vunpack.i.h.bf16 %v461_v25  ;;  %v462_v28 = vunpack.i.l.bf16 %v461_v25 }
  0x8f   :  { %396 = vmatpush1.bf16.msra.mxu0 %v395_v22  ;;  %v51_v29 = vsel %vm47_vm0, %v447_v24, %v448_v23  ;;  %v50_v30 = vsel %vm47_vm0, %v443_v13, %v447_v24 }
  0x90   :  { %v456_v31 = vpop.permute.xlu0 %455  ;;  %v409_v32 = vpack.c.bf16 %v51_v29, %v614_v4  ;;  %v411_v33 = vpack.c.bf16 %v50_v30, %v609_v2  ;;  %v87_v34 = vsel %vm85_vm2, %v462_v28, %v463_v27 }
  0x91   :  { %v458_v35 = vunpack.i.h.bf16 %v456_v31  ;;  %v457_v36 = vunpack.i.l.bf16 %v456_v31  ;;  %v57_v37 = vpop.permute.xlu1 %56  ;;  %v397_v38 = vpack.c.bf16 %v87_v34, %v68_v26 }
  0x92   :  { %410 = vmatprep.subr.bf16.mxu1 %v409_v32  ;;  %v67_v52 = vsel %vm66_vm1, %v57_v37, %v452_v17 }
  0x93   :  { %412 = vmatpush1.bf16.msra.mxu1 %v411_v33  ;;  %398 = vmatprep.subr.bf16.mxu0 %v397_v38  ;;  %v70_v43 = vsel %vm66_vm1, %v457_v36, %v458_v35  ;;  %v69_v44 = vsel %vm66_vm1, %v453_v16, %v457_v36 }
  0x94   :  { %v466_v39 = vpop.permute.xlu0 %465 }
  0x95   :  { %v468_v40 = vunpack.i.h.bf16 %v466_v39  ;;  %v467_v41 = vunpack.i.l.bf16 %v466_v39  ;;  %v471_v42 = vpop.permute.xlu1 %470 }
  0x96   :  { %v473_v45 = vunpack.i.h.bf16 %v471_v42  ;;  %v472_v46 = vunpack.i.l.bf16 %v471_v42 }
  0x97   :  { %v89_v47 = vsel %vm85_vm2, %v467_v41, %v468_v40  ;;  %v88_v48 = vsel %vm85_vm2, %v463_v27, %v467_v41 }
  0x98   :  { %v76_v49 = vpop.permute.xlu0 %75  ;;  %v413_v50 = vpack.c.bf16 %v89_v47, %v70_v43  ;;  %v415_v51 = vpack.c.bf16 %v88_v48, %v69_v44  ;;  %v106_v58 = vsel %vm104_vm3, %v472_v46, %v473_v45 }
  0x99   :  { %v86_v53 = vsel %vm85_vm2, %v76_v49, %v462_v28  ;;  %v481_v55 = vpop.permute.xlu1 %480 }
  0x9a   :  { %v399_v54 = vpack.c.bf16 %v86_v53, %v67_v52  ;;  %414 = vmatprep.subr.bf16.mxu1 %v413_v50  ;;  %v483_v56 = vunpack.i.h.bf16 %v481_v55  ;;  %v482_v57 = vunpack.i.l.bf16 %v481_v55 }
  0x9b   :  { %416 = vmatpush1.bf16.msra.mxu1 %v415_v51  ;;  %v190_v51 = vld [vmem:[%s688_s1 + $0x8] sm:$0xff] }
  0x9c   :  { %v476_v59 = vpop.permute.xlu0 %475  ;;  %400 = vmatpush1.bf16.msra.mxu0 %v399_v54  ;;  %v125_v60 = vsel %vm123_vm4, %v482_v57, %v483_v56 }
  0x9d   :  { %v478_v61 = vunpack.i.h.bf16 %v476_v59  ;;  %v477_v62 = vunpack.i.l.bf16 %v476_v59  ;;  %v95_v63 = vpop.permute.xlu1 %94  ;;  %v401_v0 = vpack.c.bf16 %v125_v60, %v106_v58 }
  0x9e   :  { %v105_v15 = vsel %vm104_vm3, %v95_v63, %v472_v46  ;;  %v189_v46 = vld [vmem:[%s688_s1] sm:$0xff]  ;;  %s570_s1 = smov [#allocation5]  }
  0x9f   :  { %402 = vmatprep.subr.bf16.mxu0 %v401_v0  ;;  %v108_v5 = vsel %vm104_vm3, %v477_v62, %v478_v61  ;;  %v107_v6 = vsel %vm104_vm3, %v473_v45, %v477_v62  ;;  %s377_s11 = sshll.u32 %s570_s1, 4  ;;  %s378_s11 = int_to_ptr.vmem [resolvable:$true] %s377_s11 }
  0xa0   :  { %v486_v1 = vpop.permute.xlu0 %485  ;;  %s533_s12 = scalar_lea.vmem %s378_s11, 1024  ;;  %p538_p9 = scmp.lt.s32.totalorder %s378_s11, %s378_s11 }
  0xa1   :  { %v488_v2 = vunpack.i.h.bf16 %v486_v1  ;;  %v487_v3 = vunpack.i.l.bf16 %v486_v1  ;;  %v491_v4 = vpop.permute.xlu1 %490  ;;  %p534_p8 = scmp.ne.s32.totalorder %s378_s11, %s533_s12  ;;  %p539_p10 = scmp.lt.s32.totalorder %s533_s12, %s533_s12 }
  0xa2   :  { %v493_v8 = vunpack.i.h.bf16 %v491_v4  ;;  %v492_v9 = vunpack.i.l.bf16 %v491_v4 }
  0xa3   :  { %v127_v10 = vsel %vm123_vm4, %v487_v3, %v488_v2  ;;  %v126_v11 = vsel %vm123_vm4, %v483_v56, %v487_v3  ;;  %p540_p11 = por %p539_p10, %p538_p9 }
  0xa4   :  { %v114_v12 = vpop.permute.xlu0 %113  ;;  %v417_v13 = vpack.c.bf16 %v127_v10, %v108_v5  ;;  %v419_v14 = vpack.c.bf16 %v126_v11, %v107_v6  ;;  %v144_v21 = vsel %vm142_vm5, %v492_v9, %v493_v8 }
  0xa5   :  { %v124_v16 = vsel %vm123_vm4, %v114_v12, %v482_v57  ;;  %v501_v18 = vpop.permute.xlu1 %500  ;;  %p541_p12 = pnand %p540_p11, %p534_p8 }
  0xa6   :  { %v403_v17 = vpack.c.bf16 %v124_v16, %v105_v15  ;;  %418 = vmatprep.subr.bf16.mxu1 %v417_v13  ;;  %v503_v19 = vunpack.i.h.bf16 %v501_v18  ;;  %v502_v20 = vunpack.i.l.bf16 %v501_v18 }
  0xa7   :  { %420 = vmatpush1.bf16.msra.mxu1 %v419_v14 }
  0xa8   :  { %v496_v22 = vpop.permute.xlu0 %495  ;;  %404 = vmatpush1.bf16.msra.mxu0 %v403_v17  ;;  %v163_v23 = vsel %vm161_vm6, %v502_v20, %v503_v19 }
  0xa9   :  { %v133_v24 = vpop.permute.xlu1 %132  ;;  %v405_v25 = vpack.c.bf16 %v163_v23, %v144_v21  ;;  %v498_v26 = vunpack.i.h.bf16 %v496_v22  ;;  %v497_v27 = vunpack.i.l.bf16 %v496_v22 }
  0xaa   :  { %v143_v39 = vsel %vm142_vm5, %v133_v24, %v492_v9 }
  0xab   :  { %406 = vmatprep.subr.bf16.mxu0 %v405_v25  ;;  %v146_v32 = vsel %vm142_vm5, %v497_v27, %v498_v26  ;;  %v145_v34 = vsel %vm142_vm5, %v493_v8, %v497_v27 }
  0xac   :  { %v506_v28 = vpop.permute.xlu0 %505 }
  0xad   :  { %v508_v29 = vunpack.i.h.bf16 %v506_v28  ;;  %v507_v30 = vunpack.i.l.bf16 %v506_v28  ;;  %v173_v31 = vpop.permute.xlu1 %172 }
  0xaf   :  { %v165_v33 = vsel %vm161_vm6, %v507_v30, %v508_v29  ;;  %v164_v35 = vsel %vm161_vm6, %v503_v19, %v507_v30 }
  0xb0   :  { %v152_v36 = vpop.permute.xlu0 %151  ;;  %v421_v37 = vpack.c.bf16 %v165_v33, %v146_v32  ;;  %v423_v38 = vpack.c.bf16 %v164_v35, %v145_v34 }
  0xb1   :  { %v162_v40 = vsel %vm161_vm6, %v152_v36, %v502_v20  ;;  %v177_v42 = vpop.permute.xlu1 %176 }
  0xb2   :  { %v407_v41 = vpack.c.bf16 %v162_v40, %v143_v39  ;;  %422 = vmatprep.subr.bf16.mxu1 %v421_v37 }
  0xb3   :  { %424 = vmatpush1.bf16.msra.mxu1 %v423_v38 }
  0xb4   :  { %v175_v43 = vpop.permute.xlu0 %174  ;;  %408 = vmatpush1.bf16.msra.mxu0 %v407_v41 }
  0xb5   :  { %v182_v44 = vsel %vm180_vm7, %v173_v31, %v175_v43  ;;  %v171_v45 = vpop.permute.xlu1 %170  ;;  %v183_v50 = vsel %vm180_vm7, %v175_v43, %v177_v42 }
  0xb6   :  { %226 = vmatprep.subr.mxu0 %v182_v44  ;;  %v181_v47 = vsel %vm180_vm7, %v171_v45, %v173_v31 }
  0xb8   :  { %v179_v48 = vpop.permute.xlu0 %178  ;;  %227 = vmatpush1.msra.mxu0 %v181_v47 }
  0xb9   :  { %v184_v49 = vsel %vm180_vm7, %v177_v42, %v179_v48  ;;  %389 = vmatmul.mubr.msk.f32.vlgmr.msra.gmra.mrb[0].mxu0 %vm203_vm8, %v189_v46 }
  0xba   :  { %303 = vmatprep.subr.mxu1 %v184_v49  ;;  %280 = vmatprep.mubr.f32.mxu0 %v567_v7 }
  0xbb   :  { %304 = vmatpush1.msra.mxu1 %v183_v50 }
  0xbc   :  { %391 = vmatmul.mubr.msk.f32.vlgmr.msra.gmra.mrb[0].mxu1 %vm203_vm8, %v189_v46 }
  0xbd   :  { %390 = vmatmul.mubr.msk.f32.gmra.mrb[2].mxu0 %vm203_vm8, %v190_v51  ;;  %357 = vmatprep.mubr.f32.mxu1 %v567_v7 }
  0xc0   :  { %392 = vmatmul.mubr.msk.f32.gmra.mrb[2].mxu1 %vm203_vm8, %v190_v51 }
  0xc6   :  { %v201_v57 = vpop.permute.xlu1 %200 }
  0xc9   :  { %v196_v52 = vpop.permute.xlu0 %195 }
 0x18c   :  { %v276_v53 = vpop.f32.mrb[0].mxu0 }
 0x18d   :  { %v277_v54 = vadd.f32 %v276_v53, %v196_v52  ;;  %v278_v55 = vpop.f32.mrb[1].mxu0 }
 0x18e   :  { %v279_v56 = vadd.f32 %v278_v55, %v196_v52 }
 0x18f   :  { %364 = vst [vmem:[#allocation5] sm:$0xff] %v277_v54  ;;  %v353_v58 = vpop.f32.mrb[0].mxu1 }
 0x190   :  { %365 = vst [vmem:[#allocation5 + $0x8] sm:$0xff] %v279_v56  ;;  %v354_v59 = vadd.f32 %v353_v58, %v196_v52  ;;  %v355_v60 = vpop.f32.mrb[1].mxu1  ;;  %v282_v61 = vpop.f32.mrb[2].mxu0 }
 0x191   :  { %v356_v62 = vadd.f32 %v355_v60, %v196_v52  ;;  %v283_v63 = vadd.f32 %v282_v61, %v201_v57  ;;  %v284_v0 = vpop.f32.mrb[3].mxu0 }
 0x192   :  { %366 = vst [vmem:[#allocation5 + $0x10] sm:$0xff] %v354_v59  ;;  %v285_v7 = vadd.f32 %v284_v0, %v201_v57 }
 0x193   :  { %367 = vst [vmem:[#allocation5 + $0x18] sm:$0xff] %v356_v62  ;;  %368 = vst [vmem:[#allocation5 + $0x20] sm:$0xff] %v283_v63  ;;  %v359_v1 = vpop.f32.mrb[2].mxu1 }
 0x194   :  { %369 = vst [vmem:[#allocation5 + $0x28] sm:$0xff] %v285_v7  ;;  %v360_v2 = vadd.f32 %v359_v1, %v201_v57  ;;  %v361_v3 = vpop.f32.mrb[3].mxu1 }
 0x195   :  { %v362_v4 = vadd.f32 %v361_v3, %v201_v57 }
 0x196   :  { %370 = vst [vmem:[#allocation5 + $0x30] sm:$0xff] %v360_v2 }
 0x197   :  { %371 = vst [vmem:[#allocation5 + $0x38] sm:$0xff] %v362_v4 }
 0x198   :  { %544 = shalt.err (!%p541_p12)
}
 0x199   :  { %s545_s15 = scalar_lea.hbm %s690_s3, 1024 }
 0x19a   :  { %p546_p13 = scmp.ne.s32.totalorder %s690_s3, %s545_s15  ;;  %p549_p0 = scmp.lt.u32.totalorder %s545_s15, %s690_s3 }
 0x19c   :  { %p551_p1 = pnand %p549_p0, %p546_p13 }
 0x19e   :  { %554 = shalt.err (!%p551_p1)
}
 0x19f   :  { %s571_s20 = smov 512   ;;  %s572_s21 = smov 32  }
 0x1a0   :  { %383 = dma.vmem_to_hbm [thread:$0]  %s378_s11, 1024, %s690_s3, [#allocation4], %s571_s20, %s571_s20, %s572_s21  }
 0x1a1   :  { %557 = dma.done.wait [#allocation4], 1024  }
 0x1a2   :  { %558 = vsyncadd [#allocation4], 4294966272 }
 0x1a3   :  { %387 = vsyncpa [#allocation3], 1 }
 0x1a4   :  { %388 = vsyncpa [#allocation4], 1 }

</bundles_post_ra>
